<compile_context>
chip_gen: v7x
topology: tpu7x:2x2x1
jax: 0.10.0
libtpu: 0.0.40
codegen_flags: <defaults>
</compile_context>

<pallas_src>
import functools

import jax
import jax.numpy as jnp
from jax.experimental import pallas as pl
from jax.experimental.pallas import tpu as pltpu


def _round_up(v, mult):
    return ((v + mult - 1) // mult) * mult


# ---------------------------------------------------------------------------
# Kernel 1: batch-independent per-column weight stats (the hoisted renorm).
# grid = (Dout_tiles, Din_tiles); Din is the reduction ("arbitrary") axis.
# ---------------------------------------------------------------------------
def _wstats_kernel(w_ref, wmul_ref, wlen_ref, ssq_ref):
    k = pl.program_id(1)

    @pl.when(k == 0)
    def _():
        ssq_ref[...] = jnp.zeros_like(ssq_ref)

    w = w_ref[...]                                          # (tk, tn) f32
    ssq_ref[...] += jnp.sum(w * w, axis=0, keepdims=True)   # (1, tn)

    @pl.when(k == pl.num_programs(1) - 1)
    def _():
        col_norm = jnp.sqrt(ssq_ref[...])                   # (1, tn)
        big = col_norm > 1e-5
        inv = pl.reciprocal(jnp.maximum(col_norm, 1e-30), approx=False)
        # torch.renorm(w, 2, 1, 1e-5).mul(1e5):  scale*1e5 == 1/col_norm
        # where col_norm > 1e-5, else 1e5.
        wmul_ref[...] = jnp.where(big, inv, jnp.full_like(col_norm, 1e5))
        # ||ww_col||_2 == col_norm * scale * 1e5  (== 1 on the renormed branch)
        wlen_ref[...] = jnp.where(big, jnp.ones_like(col_norm), col_norm * 1e5)


# ---------------------------------------------------------------------------
# Kernel 2: hot path — tiled matmul + per-row / per-column normalization.
# grid = (B_tiles, Dout_tiles, Din_tiles), Din last ("arbitrary").
# ---------------------------------------------------------------------------
def _cos_linear_kernel(m_ref, x_ref, w_ref, wmul_ref, wlen_ref,
                       cos_ref, phi_ref, acc_ref, xsq_ref, *, compute_dtype):
    k = pl.program_id(2)

    @pl.when(k == 0)
    def _():
        acc_ref[...] = jnp.zeros_like(acc_ref)
        xsq_ref[...] = jnp.zeros_like(xsq_ref)

    x = x_ref[...]                                          # (tb, tk) f32
    w = w_ref[...]                                          # (tk, tn) f32
    if compute_dtype is not None:                           # optional bf16 MXU path
        xd = x.astype(compute_dtype)
        wd = w.astype(compute_dtype)
    else:
        xd, wd = x, w
    acc_ref[...] += jnp.dot(xd, wd, preferred_element_type=jnp.float32)
    # x row sum-of-squares accumulated alongside the matmul (stays f32).
    xsq_ref[...] += jnp.sum(x * x, axis=1, keepdims=True)   # (tb, 1)

    @pl.when(k == pl.num_programs(2) - 1)
    def _():
        m = m_ref[0, 0]                                     # SMEM scalar
        wmul = wmul_ref[...]                                # (1, tn)
        wlen = wlen_ref[...]                                # (1, tn)
        xlen = jnp.sqrt(xsq_ref[...])                       # (tb, 1)
        denom = jnp.maximum(xlen * wlen, 1e-8)              # (tb, tn)
        ct = acc_ref[...] * wmul * pl.reciprocal(denom, approx=False)
        ct = jnp.clip(ct, -1.0, 1.0)
        cos_ref[...] = ct
        phi_ref[...] = ct - m


def cos_linear(x, weight, m=0.35, *, tb=None, tn=None, tk=None,
               compute_dtype=None):
    """x: (B, in_features) f32, weight: (in_features, out_features) f32.

    Returns (cos_theta, phi_theta), both (B, out_features) float32.
    """
    B, din = x.shape
    din_w, dout = weight.shape
    assert din == din_w

    # Tile sizes: B tile multiple of 8 (sublane), Din/Dout tiles multiples of
    # 128 (lane / MXU).  Defaults keep the double-buffered footprint well
    # under the 32 MiB scoped-VMEM default on all of v5e / v6e / v7x.
    tb = min(128, _round_up(B, 8)) if tb is None else tb
    tn = min(512, _round_up(dout, 128)) if tn is None else tn
    tk = min(512, _round_up(din, 128)) if tk is None else tk
    assert tb % 8 == 0 and tn % 128 == 0 and tk % 128 == 0

    b_pad = _round_up(B, tb)
    n_pad = _round_up(dout, tn)
    k_pad = _round_up(din, tk)

    # Zero padding is exact: zero rows/cols contribute nothing to any norm or
    # to the matmul, and padded outputs are sliced off below.
    x_p = jnp.pad(x.astype(jnp.float32), ((0, b_pad - B), (0, k_pad - din)))
    w_p = jnp.pad(weight.astype(jnp.float32),
                  ((0, k_pad - din), (0, n_pad - dout)))

    # ---- batch-independent per-column stats (hoisted renorm) ----
    wmul, wlen = pl.pallas_call(
        _wstats_kernel,
        out_shape=(jax.ShapeDtypeStruct((1, n_pad), jnp.float32),
                   jax.ShapeDtypeStruct((1, n_pad), jnp.float32)),
        grid_spec=pltpu.PrefetchScalarGridSpec(
            num_scalar_prefetch=0,
            grid=(n_pad // tn, k_pad // tk),
            in_specs=[pl.BlockSpec((tk, tn), lambda j, k: (k, j))],
            out_specs=[pl.BlockSpec((1, tn), lambda j, k: (0, j)),
                       pl.BlockSpec((1, tn), lambda j, k: (0, j))],
            scratch_shapes=[pltpu.VMEM((1, tn), jnp.float32)]),
        compiler_params=pltpu.CompilerParams(
            dimension_semantics=("parallel", "arbitrary")),
    )(w_p)

    # ---- hot kernel: tiled matmul + normalization ----
    m_arr = jnp.full((1, 1), m, dtype=jnp.float32)
    kernel = functools.partial(_cos_linear_kernel, compute_dtype=compute_dtype)
    cos_p, phi_p = pl.pallas_call(
        kernel,
        out_shape=(jax.ShapeDtypeStruct((b_pad, n_pad), jnp.float32),
                   jax.ShapeDtypeStruct((b_pad, n_pad), jnp.float32)),
        grid_spec=pltpu.PrefetchScalarGridSpec(
            num_scalar_prefetch=0,
            grid=(b_pad // tb, n_pad // tn, k_pad // tk),
            in_specs=[
                pl.BlockSpec(memory_space=pltpu.MemorySpace.SMEM),    # m
                pl.BlockSpec((tb, tk), lambda i, j, k: (i, k)),       # x
                pl.BlockSpec((tk, tn), lambda i, j, k: (k, j)),       # w
                pl.BlockSpec((1, tn), lambda i, j, k: (0, j)),        # wmul
                pl.BlockSpec((1, tn), lambda i, j, k: (0, j)),        # wlen
            ],
            out_specs=[
                pl.BlockSpec((tb, tn), lambda i, j, k: (i, j)),       # cos
                pl.BlockSpec((tb, tn), lambda i, j, k: (i, j)),       # phi
            ],
            scratch_shapes=[pltpu.VMEM((tb, tn), jnp.float32),        # acc
                            pltpu.VMEM((tb, 1), jnp.float32)]),       # xlen^2
        compiler_params=pltpu.CompilerParams(
            dimension_semantics=("parallel", "parallel", "arbitrary")),
    )(m_arr, x_p, w_p, wmul, wlen)

    return cos_p[:B, :dout], phi_p[:B, :dout]


# ---------------------------------------------------------------------------
# Test helpers (pure JAX reference).
# ---------------------------------------------------------------------------
def _init_weight(key, in_features, out_features):
    # Mirrors: weight.uniform_(-1, 1).renorm_(2, 1, 1e-5).mul_(1e5)
    w = jax.random.uniform(key, (in_features, out_features),
                           minval=-1.0, maxval=1.0, dtype=jnp.float32)
    col_norm = jnp.sqrt(jnp.sum(w * w, axis=0, keepdims=True))
    scale = jnp.where(col_norm > 1e-5, 1e-5 / col_norm, 1.0)
    return w * scale * 1e5


def _reference(x, w, m=0.35):
    col_norm = jnp.sqrt(jnp.sum(w * w, axis=0, keepdims=True))
    ww = w * jnp.where(col_norm > 1e-5, 1e-5 / col_norm, 1.0) * 1e5
    xlen = jnp.sqrt(jnp.sum(x * x, axis=1, keepdims=True))
    wlen = jnp.sqrt(jnp.sum(ww * ww, axis=0, keepdims=True))
    mm = jnp.dot(x, ww, precision=jax.lax.Precision.HIGHEST)
    ct = jnp.clip(mm / jnp.maximum(xlen * wlen, 1e-8), -1.0, 1.0)
    return ct, ct - m


if __name__ == "__main__":
    key = jax.random.PRNGKey(0)
    kx1, kw1, kx2, kw2 = jax.random.split(key, 4)

    # --- small case matching the module's toy shapes ---
    B, IN_F, OUT_F = 8, 32, 16
    x1 = jax.random.normal(kx1, (B, IN_F), dtype=jnp.float32)
    w1 = _init_weight(kw1, IN_F, OUT_F)

    cos1, phi1 = cos_linear(x1, w1, m=0.35)
    jax.block_until_ready((cos1, phi1))
    rc1, rp1 = _reference(x1, w1, m=0.35)
    assert cos1.shape == (B, OUT_F) and phi1.shape == (B, OUT_F)
    assert jnp.allclose(cos1, rc1, atol=2e-4, rtol=2e-4)
    assert jnp.allclose(phi1, rp1, atol=2e-4, rtol=2e-4)

    # --- ragged case with forced small tiles: exercises padding, multi-tile
    #     grid and the Din (K-axis) accumulator path ---
    B2, IN2, OUT2 = 40, 200, 300
    x2 = jax.random.normal(kx2, (B2, IN2), dtype=jnp.float32)
    w2 = jax.random.uniform(kw2, (IN2, OUT2), minval=-1.0, maxval=1.0,
                            dtype=jnp.float32)
    cos2, phi2 = cos_linear(x2, w2, m=0.2, tb=16, tn=128, tk=128)
    jax.block_until_ready((cos2, phi2))
    rc2, rp2 = _reference(x2, w2, m=0.2)
    assert cos2.shape == (B2, OUT2) and phi2.shape == (B2, OUT2)
    assert jnp.allclose(cos2, rc2, atol=2e-4, rtol=2e-4)
    assert jnp.allclose(phi2, rp2, atol=2e-4, rtol=2e-4)

    print("KERNEL_OK")
</pallas_src>

<mosaic_0001>
module attributes {stable_mosaic.version = 11 : i64} {
  func.func @_wstats_kernel(%arg0: i32, %arg1: i32, %arg2: memref<128x128xf32, #tpu.memory_space<vmem>>, %arg3: memref<1x128xf32, #tpu.memory_space<vmem>>, %arg4: memref<1x128xf32, #tpu.memory_space<vmem>>, %arg5: memref<1x128xf32, #tpu.memory_space<vmem>>) attributes {dimension_semantics = [#tpu.dimension_semantics<parallel>, #tpu.dimension_semantics<arbitrary>], iteration_bounds = array<i64: 1, 1>, scalar_prefetch = 0 : i64, scratch_operands = 1 : i64, tpu.core_type = #tpu.core_type<tc>, window_params = [{transform_indices = @transform_0, window_bounds = array<i64: 128, 128>}, {transform_indices = @transform_1, window_bounds = array<i64: 1, 128>}, {transform_indices = @transform_2, window_bounds = array<i64: 1, 128>}]} {
    %c0_i32 = arith.constant 0 : i32
    %0 = arith.cmpi eq, %arg1, %c0_i32 : i32
    %1 = arith.extui %0 : i1 to i32
    %c0_i32_0 = arith.constant 0 : i32
    %2 = arith.cmpi ne, %1, %c0_i32_0 : i32
    scf.if %2 {
      %cst_8 = arith.constant 0.000000e+00 : f32
      %13 = vector.broadcast %cst_8 : f32 to vector<1x128xf32>
      %c0_9 = arith.constant 0 : index
      %c0_10 = arith.constant 0 : index
      %14 = vector.load %arg5[%c0_9, %c0_10] : memref<1x128xf32, #tpu.memory_space<vmem>>, vector<1x128xf32>
      tpu.vector_store %arg5[%c0_9, %c0_10], %13 {strides = array<i32>} : memref<1x128xf32, #tpu.memory_space<vmem>>, vector<1x128xf32>,
    } else {
    }
    %c0 = arith.constant 0 : index
    %c0_1 = arith.constant 0 : index
    %3 = vector.load %arg2[%c0, %c0_1] : memref<128x128xf32, #tpu.memory_space<vmem>>, vector<128x128xf32>
    %c0_2 = arith.constant 0 : index
    %c0_3 = arith.constant 0 : index
    %4 = vector.load %arg5[%c0_2, %c0_3] : memref<1x128xf32, #tpu.memory_space<vmem>>, vector<1x128xf32>
    %5 = arith.mulf %3, %3 : vector<128x128xf32>
    %cst = arith.constant dense<0.000000e+00> : vector<128xf32>
    %6 = vector.multi_reduction <add>, %5, %cst [0] : vector<128x128xf32> to vector<128xf32>
    %7 = vector.shape_cast %6 : vector<128xf32> to vector<1x128xf32>
    %8 = arith.addf %4, %7 : vector<1x128xf32>
    %c0_4 = arith.constant 0 : index
    %c0_5 = arith.constant 0 : index
    %9 = vector.load %arg5[%c0_4, %c0_5] : memref<1x128xf32, #tpu.memory_space<vmem>>, vector<1x128xf32>
    tpu.vector_store %arg5[%c0_4, %c0_5], %8 {strides = array<i32>} : memref<1x128xf32, #tpu.memory_space<vmem>>, vector<1x128xf32>,
    %c0_i32_6 = arith.constant 0 : i32
    %10 = arith.cmpi eq, %arg1, %c0_i32_6 : i32
    %11 = arith.extui %10 : i1 to i32
    %c0_i32_7 = arith.constant 0 : i32
    %12 = arith.cmpi ne, %11, %c0_i32_7 : i32
    scf.if %12 {
      %c0_8 = arith.constant 0 : index
      %c0_9 = arith.constant 0 : index
      %13 = vector.load %arg5[%c0_8, %c0_9] : memref<1x128xf32, #tpu.memory_space<vmem>>, vector<1x128xf32>
      %14 = math.sqrt %13 : vector<1x128xf32>
      %cst_10 = arith.constant 9.99999974E-6 : f32
      %15 = vector.broadcast %cst_10 : f32 to vector<1x128xf32>
      %16 = arith.cmpf ogt, %14, %15 : vector<1x128xf32>
      %cst_11 = arith.constant 1.000000e-30 : f32
      %17 = vector.broadcast %cst_11 : f32 to vector<1x128xf32>
      %18 = arith.maximumf %14, %17 : vector<1x128xf32>
      %19 = tpu.reciprocal %18 : vector<1x128xf32> -> vector<1x128xf32>
      %cst_12 = arith.constant 1.000000e+05 : f32
      %20 = vector.broadcast %cst_12 : f32 to vector<1x128xf32>
      %21 = arith.select %16, %19, %20 : vector<1x128xi1>, vector<1x128xf32>
      %c0_13 = arith.constant 0 : index
      %c0_14 = arith.constant 0 : index
      %22 = vector.load %arg3[%c0_13, %c0_14] : memref<1x128xf32, #tpu.memory_space<vmem>>, vector<1x128xf32>
      tpu.vector_store %arg3[%c0_13, %c0_14], %21 {strides = array<i32>} : memref<1x128xf32, #tpu.memory_space<vmem>>, vector<1x128xf32>,
      %cst_15 = arith.constant 1.000000e+00 : f32
      %23 = vector.broadcast %cst_15 : f32 to vector<1x128xf32>
      %cst_16 = arith.constant 1.000000e+05 : f32
      %24 = vector.broadcast %cst_16 : f32 to vector<1x128xf32>
      %25 = arith.mulf %14, %24 : vector<1x128xf32>
      %26 = arith.select %16, %23, %25 : vector<1x128xi1>, vector<1x128xf32>
      %c0_17 = arith.constant 0 : index
      %c0_18 = arith.constant 0 : index
      %27 = vector.load %arg4[%c0_17, %c0_18] : memref<1x128xf32, #tpu.memory_space<vmem>>, vector<1x128xf32>
      tpu.vector_store %arg4[%c0_17, %c0_18], %26 {strides = array<i32>} : memref<1x128xf32, #tpu.memory_space<vmem>>, vector<1x128xf32>,
    } else {
    }
    return
  }
  func.func @transform_0(%arg0: i32, %arg1: i32) -> (i32, i32) {
    %c0_i32 = arith.constant 0 : i32
    return %arg1, %arg0 : i32, i32
  }
  func.func @transform_1(%arg0: i32, %arg1: i32) -> (i32, i32) {
    %c0_i32 = arith.constant 0 : i32
    %c0_i32_0 = arith.constant 0 : i32
    return %c0_i32, %arg0 : i32, i32
  }
  func.func @transform_2(%arg0: i32, %arg1: i32) -> (i32, i32) {
    %c0_i32 = arith.constant 0 : i32
    %c0_i32_0 = arith.constant 0 : i32
    return %c0_i32, %arg0 : i32, i32
  }
}

</mosaic_0001>

<bundles_post_ra>
// kernel: tpu_custom_call.1
= control target key start
LH: loop header
LB: loop body
LE: loop exit
PB: predicated region body
PF: predicated region fallthrough
CT: control target
= control target key end

     0   :  { %8 = vsyncpa [#allocation4], 0  ;;  %s276_s0 = inlined_call_operand.hbm [shape: f32[128,128], index: 0, kind: input, shape index: {}]   ;;  %s277_s1 = inlined_call_operand.hbm [shape: f32[1,128], index: 1, kind: output, shape index: {0}]   ;;  %s278_s2 = inlined_call_operand.hbm [shape: f32[1,128], index: 2, kind: output, shape index: {1}]  }
   0x1   :  { %9 = vsyncpa [#allocation5], 0 }
   0x2   :  { %10 = vsyncpa [#allocation8], 0  ;;  %s217_s9 = smov [#allocation3]   ;;  %s145_s13 = scalar_lea.hbm %s276_s0, 2048 }
   0x3   :  { %s16_s10 = sshll.u32 %s217_s9, 4  ;;  %p146_p0 = scmp.ne.s32.totalorder %s276_s0, %s145_s13  ;;  %s17_s10 = int_to_ptr.vmem [resolvable:$true] %s16_s10 }
   0x4   :  { %p149_p1 = scmp.lt.u32.totalorder %s145_s13, %s276_s0 }
   0x6   :  { %p151_p2 = pnand %p149_p1, %p146_p0 }
   0x8   :  { %154 = shalt.err (!%p151_p2)
}
   0x9   :  { %s155_s18 = scalar_lea.vmem %s17_s10, 2048  ;;  %p160_p4 = scmp.lt.s32.totalorder %s17_s10, %s17_s10 }
   0xa   :  { %p156_p3 = scmp.ne.s32.totalorder %s17_s10, %s155_s18  ;;  %p161_p5 = scmp.lt.s32.totalorder %s155_s18, %s155_s18 }
   0xc   :  { %p162_p6 = por %p161_p5, %p160_p4 }
   0xe   :  { %p163_p7 = pnand %p162_p6, %p156_p3 }
  0x10   :  { %166 = shalt.err (!%p163_p7)
}
  0x11   :  { %s218_s19 = smov 128   ;;  %s219_s20 = smov 8  }
  0x12   :  { %22 = dma.hbm_to_vmem [thread:$0]  %s276_s0, 2048, %s17_s10, [#allocation4], %s218_s19, %s218_s19, %s219_s20  }
  0x13   :  { %211 = dma.done.wait [#allocation4], 2048  }
  0x14   :  { %212 = vsyncadd [#allocation4], 4294965248  ;;  %v220_v0 = vmov 0.0   ;;  %v31_v1 = vld [vmem:[#allocation3] sm:$0xff]  ;;  %v32_v2 = vld [vmem:[#allocation3 + $0x8] sm:$0xff]  ;;  %s221_s0 = smov [#allocation7]  }
  0x15   :  { %30 = vst [vmem:[#allocation2] sm:$0x1] %v220_v0  ;;  %v33_v3 = vld [vmem:[#allocation3 + $0x10] sm:$0xff]  ;;  %v34_v4 = vld [vmem:[#allocation3 + $0x18] sm:$0xff]  ;;  %v48_v5 = vmul.f32 %v31_v1, %v31_v1  ;;  %v49_v6 = vmul.f32 %v32_v2, %v32_v2  ;;  %v35_v8 = vld [vmem:[#allocation3 + $0x20] sm:$0xff]  ;;  %s122_s23 = sshll.u32 %s221_s0, 4  ;;  %s123_s23 = int_to_ptr.vmem [resolvable:$true] %s122_s23 }
  0x16   :  { %v50_v7 = vmul.f32 %v33_v3, %v33_v3  ;;  %v51_v9 = vmul.f32 %v34_v4, %v34_v4  ;;  %v36_v11 = vld [vmem:[#allocation3 + $0x28] sm:$0xff]  ;;  %v52_v12 = vmul.f32 %v35_v8, %v35_v8  ;;  %v37_v14 = vld [vmem:[#allocation3 + $0x30] sm:$0xff]  ;;  %v38_v17 = vld [vmem:[#allocation3 + $0x38] sm:$0xff]  ;;  %s167_s24 = scalar_lea.vmem %s123_s23, 16  ;;  %s171_s25 = scalar_lea.vmem %s123_s23, 32 }
  0x17   :  { %v64_v10 = vadd.f32 %v49_v6, %v48_v5  ;;  %v53_v15 = vmul.f32 %v36_v11, %v36_v11  ;;  %v54_v18 = vmul.f32 %v37_v14, %v37_v14  ;;  %v39_v20 = vld [vmem:[#allocation3 + $0x40] sm:$0xff]  ;;  %v55_v21 = vmul.f32 %v38_v17, %v38_v17  ;;  %v40_v23 = vld [vmem:[#allocation3 + $0x48] sm:$0xff]  ;;  %v41_v26 = vld [vmem:[#allocation3 + $0x50] sm:$0xff]  ;;  %p168_p8 = scmp.ne.s32.totalorder %s123_s23, %s167_s24  ;;  %p172_p9 = scmp.lt.s32.totalorder %s123_s23, %s123_s23 }
  0x18   :  { %v56_v24 = vmul.f32 %v39_v20, %v39_v20  ;;  %v57_v27 = vmul.f32 %v40_v23, %v40_v23  ;;  %v42_v29 = vld [vmem:[#allocation3 + $0x58] sm:$0xff]  ;;  %v58_v30 = vmul.f32 %v41_v26, %v41_v26  ;;  %v43_v32 = vld [vmem:[#allocation3 + $0x60] sm:$0xff]  ;;  %v44_v35 = vld [vmem:[#allocation3 + $0x68] sm:$0xff]  ;;  %p173_p10 = scmp.lt.s32.totalorder %s171_s25, %s167_s24 }
  0x19   :  { %v65_v13 = vadd.f32 %v64_v10, %v50_v7  ;;  %v59_v33 = vmul.f32 %v42_v29, %v42_v29  ;;  %v60_v36 = vmul.f32 %v43_v32, %v43_v32  ;;  %v45_v38 = vld [vmem:[#allocation3 + $0x70] sm:$0xff]  ;;  %v61_v39 = vmul.f32 %v44_v35, %v44_v35  ;;  %v46_v41 = vld [vmem:[#allocation3 + $0x78] sm:$0xff] }
  0x1a   :  { %v62_v42 = vmul.f32 %v45_v38, %v45_v38  ;;  %v63_v44 = vmul.f32 %v46_v41, %v46_v41  ;;  %p174_p11 = por %p173_p10, %p172_p9 }
  0x1b   :  { %v66_v16 = vadd.f32 %v65_v13, %v51_v9 }
  0x1c   :  { %v47_v53 = vld [vmem:[#allocation2] sm:$0x1]  ;;  %p175_p12 = pnand %p174_p11, %p168_p8 }
  0x1d   :  { %v67_v19 = vadd.f32 %v66_v16, %v52_v12 }
  0x1f   :  { %v68_v22 = vadd.f32 %v67_v19, %v53_v15 }
  0x21   :  { %v69_v25 = vadd.f32 %v68_v22, %v54_v18 }
  0x23   :  { %v70_v28 = vadd.f32 %v69_v25, %v55_v21 }
  0x25   :  { %v71_v31 = vadd.f32 %v70_v28, %v56_v24 }
  0x27   :  { %v72_v34 = vadd.f32 %v71_v31, %v57_v27 }
  0x29   :  { %v73_v37 = vadd.f32 %v72_v34, %v58_v30 }
  0x2b   :  { %v74_v40 = vadd.f32 %v73_v37, %v59_v33 }
  0x2d   :  { %v75_v43 = vadd.f32 %v74_v40, %v60_v36 }
  0x2f   :  { %v76_v45 = vadd.f32 %v75_v43, %v61_v39 }
  0x31   :  { %v77_v46 = vadd.f32 %v76_v45, %v62_v42 }
  0x33   :  { %v78_v47 = vadd.f32 %v77_v46, %v63_v44 }
  0x35   :  { %v79_v48 = vrot.slane %v78_v47, 4 }
  0x37   :  { %v80_v49 = vadd.f32 %v79_v48, %v78_v47 }
  0x39   :  { %v81_v50 = vrot.slane %v80_v49, 2 }
  0x3b   :  { %v82_v51 = vadd.f32 %v81_v50, %v80_v49 }
  0x3d   :  { %v83_v52 = vrot.slane %v82_v51, 1 }
  0x3f   :  { %v84_v54 = vadd.f32 %v83_v52, %v82_v51 }
  0x41   :  { %v85_v55 = vadd.f32 %v84_v54, %v47_v53 }
  0x43   :  { %86 = vst [vmem:[#allocation2] sm:$0x1] %v85_v55 }
  0x4a   :  { %v90_v56 = vld [vmem:[#allocation2] sm:$0x1] }
  0x4b   :  { %141 = vrsqrt.f32 %v90_v56  ;;  %vm93_vm0 = vcmp.eq.f32.partialorder %v90_v56, inf  ;;  %v96_v59 = vand.u32 2147483648, %v90_v56  ;;  %vm95_vm1 = vcmp.eq.f32.partialorder %v90_v56, 0.0 }
  0x55   :  { %v142_v57 = vpop.eup %141 }
  0x56   :  { %v92_v58 = vmul.f32 %v142_v57, %v90_v56 }
  0x58   :  { %v94_v60 = vsel %vm93_vm0, %v90_v56, %v92_v58 }
  0x59   :  { %v97_v61 = vsel %vm95_vm1, %v96_v59, %v94_v60 }
  0x5a   :  { %vm98_vm2 = vcmp.gt.f32.partialorder %v97_v61, 1e-05  ;;  %v99_v62 = vmax.f32 %v97_v61, 1e-30  ;;  %v103_v63 = vmul.f32 100000.0, %v97_v61 }
  0x5c   :  { %143 = vrcp.f32 %v99_v62  ;;  %v104_v0 = vsel %vm98_vm2, 1.0, %v103_v63 }
  0x5d   :  { %105 = vst [vmem:[#allocation7] sm:$0x1] %v104_v0 }
  0x5e   :  { %178 = shalt.err (!%p175_p12)
}
  0x5f   :  { %s179_s28 = scalar_lea.hbm %s278_s2, 16 }
  0x60   :  { %p180_p13 = scmp.ne.s32.totalorder %s278_s2, %s179_s28  ;;  %p183_p0 = scmp.lt.u32.totalorder %s179_s28, %s278_s2 }
  0x62   :  { %p185_p1 = pnand %p183_p0, %p180_p13 }
  0x64   :  { %188 = shalt.err (!%p185_p1)
}
  0x65   :  { %125 = dma.vmem_to_hbm [thread:$0]  %s123_s23, 16, %s278_s2, [#allocation8]  }
  0x66   :  { %s222_s7 = smov [#allocation6]   ;;  %v144_v1 = vpop.eup %143 }
  0x67   :  { %s112_s8 = sshll.u32 %s222_s7, 4  ;;  %v101_v2 = vsel %vm98_vm2, %v144_v1, 100000.0  ;;  %s113_s8 = int_to_ptr.vmem [resolvable:$true] %s112_s8 }
  0x68   :  { %102 = vst [vmem:[#allocation6] sm:$0x1] %v101_v2  ;;  %s189_s9 = scalar_lea.vmem %s113_s8, 16  ;;  %s193_s10 = scalar_lea.vmem %s113_s8, 32 }
  0x69   :  { %p190_p2 = scmp.ne.s32.totalorder %s113_s8, %s189_s9  ;;  %p194_p3 = scmp.lt.s32.totalorder %s113_s8, %s113_s8 }
  0x6a   :  { %p195_p4 = scmp.lt.s32.totalorder %s193_s10, %s189_s9 }
  0x6c   :  { %p196_p5 = por %p195_p4, %p194_p3 }
  0x6e   :  { %p197_p6 = pnand %p196_p5, %p190_p2 }
  0x70   :  { %200 = shalt.err (!%p197_p6)
}
  0x71   :  { %s201_s13 = scalar_lea.hbm %s277_s1, 16 }
  0x72   :  { %p202_p7 = scmp.ne.s32.totalorder %s277_s1, %s201_s13  ;;  %p205_p8 = scmp.lt.u32.totalorder %s201_s13, %s277_s1 }
  0x74   :  { %p207_p9 = pnand %p205_p8, %p202_p7 }
  0x76   :  { %210 = shalt.err (!%p207_p9)
}
  0x77   :  { %115 = dma.vmem_to_hbm [thread:$0]  %s113_s8, 16, %s277_s1, [#allocation5]  }
  0x78   :  { %213 = dma.done.wait [#allocation5], 16  }
  0x79   :  { %214 = vsyncadd [#allocation5], 4294967280 }
  0x7a   :  { %215 = dma.done.wait [#allocation8], 16  }
  0x7b   :  { %216 = vsyncadd [#allocation8], 4294967280 }
  0x7c   :  { %132 = vsyncpa [#allocation4], 1 }
  0x7d   :  { %133 = vsyncpa [#allocation5], 1 }
  0x7e   :  { %134 = vsyncpa [#allocation8], 1 }

</bundles_post_ra>
